<compile_context>
chip_gen: v7x
topology: tpu7x:2x2x1
jax: 0.10.0
libtpu: 0.0.40
codegen_flags: <defaults>
</compile_context>

<pallas_src>
import jax
import jax.numpy as jnp
from jax.experimental import pallas as pl
from jax.experimental.pallas import tpu as pltpu

BN_EPS = 1e-5   # PyTorch BatchNorm1d default eps
LANE = 128


def _round_up(x, m):
    return (x + m - 1) // m * m


def _pick_batch_tile(n):
    # Largest "nice" tile (multiple of 8 for sublane-aligned output stores) that divides N.
    # At resnet152 scale (C=2048, S=49, bf16) a 16-row tile is ~3.2 MB per buffer, so
    # 2x double-buffered feat + f32 weights stays well inside every generation's scoped VMEM.
    for t in (16, 8):
        if n % t == 0:
            return t
    return n  # fall back to a single full-batch block


def pool_linear_kernel(feat_ref, w_ref, b_ref, y_ref):
    """feat_ref: (Nt, S, C) native dtype; w_ref: (C, Ep) f32 (pre-scaled by 1/S);
    b_ref: (1, Ep) f32; y_ref: (Nt, Ep) f32."""
    # AdaptiveAvgPool2d((1,1)) as a sublane-axis sum (1/S is folded into w), f32 accumulation.
    pooled = jnp.sum(feat_ref[...].astype(jnp.float32), axis=1)          # (Nt, C)
    # Linear on the MXU, f32 accumulation, lane-dense (padded) output.
    y_ref[...] = (
        jnp.dot(pooled, w_ref[...], preferred_element_type=jnp.float32) + b_ref[...]
    )


def batchnorm1d_kernel(y_ref, gamma_ref, beta_ref, out_ref):
    """Training-mode BatchNorm1d over the FULL batch (biased batch variance)."""
    y = y_ref[...]
    mu = jnp.mean(y, axis=0, keepdims=True)
    var = jnp.mean((y - mu) * (y - mu), axis=0, keepdims=True)
    out_ref[...] = (
        gamma_ref[...] * (y - mu) * jax.lax.rsqrt(var + BN_EPS) + beta_ref[...]
    ).astype(out_ref.dtype)


def encoder_cnn_forward(trunk_features_nhwc, linear_w, linear_b, bn_gamma, bn_beta):
    """trunk_features_nhwc: (N, H, W, C) in the trunk's native dtype (e.g. bf16).
    (If the trunk emits NCHW, transpose once outside this wrapper.)

    Returns (N, embed_size) float32 matching EncoderCNN.forward head semantics:
    avgpool -> flatten -> Linear -> BatchNorm1d with batch statistics.
    """
    N, H, W, C = trunk_features_nhwc.shape
    S = H * W
    E = linear_w.shape[0]
    E_pad = _round_up(E, LANE)

    # Free reshape (contiguous), no dtype cast: the big feature map is DMA'd as-is.
    feat = trunk_features_nhwc.reshape(N, S, C)

    # Tiny wrapper-side parameter prep: fold 1/S into W^T, pad embed dim to lane width.
    w_t = linear_w.astype(jnp.float32).T / float(S)                       # (C, E)
    w_t = jnp.pad(w_t, ((0, 0), (0, E_pad - E)))
    b = jnp.pad(linear_b.astype(jnp.float32), (0, E_pad - E)).reshape(1, E_pad)
    gamma = jnp.pad(bn_gamma.astype(jnp.float32), (0, E_pad - E),
                    constant_values=1.0).reshape(1, E_pad)
    beta = jnp.pad(bn_beta.astype(jnp.float32), (0, E_pad - E)).reshape(1, E_pad)

    n_tile = _pick_batch_tile(N)
    grid = (N // n_tile,)

    feat_bytes = feat.size * feat.dtype.itemsize
    cost = pl.CostEstimate(
        flops=2 * N * C * E_pad + N * S * C,
        transcendentals=0,
        bytes_accessed=feat_bytes + w_t.size * 4 + N * E_pad * 4,
    )

    # Stage 1: avg-pool + linear, batch-tiled + pipelined, shardable across TensorCores.
    y = pl.pallas_call(
        pool_linear_kernel,
        out_shape=jax.ShapeDtypeStruct((N, E_pad), jnp.float32),
        grid=grid,
        in_specs=[
            pl.BlockSpec((n_tile, S, C), lambda i: (i, 0, 0)),   # feature tiles (pipelined)
            pl.BlockSpec((C, E_pad), lambda i: (0, 0)),          # weights, grid-invariant
            pl.BlockSpec((1, E_pad), lambda i: (0, 0)),          # bias, grid-invariant
        ],
        out_specs=pl.BlockSpec((n_tile, E_pad), lambda i: (i, 0)),
        compiler_params=pltpu.CompilerParams(
            dimension_semantics=("parallel",),
            vmem_limit_bytes=32 * 1024 * 1024,   # safe on v5e/v6e/v7x; headroom over defaults
        ),
        cost_estimate=cost,
    )(feat, w_t, b)

    # Stage 2: BatchNorm1d over the full (N, E_pad) result — kept separate so batch
    # statistics are exact despite the batch tiling in stage 1. Padded columns are all
    # zero (var=0), so they normalize to 0 and are sliced away below.
    vmem = pl.BlockSpec(memory_space=pltpu.MemorySpace.VMEM)
    out = pl.pallas_call(
        batchnorm1d_kernel,
        out_shape=jax.ShapeDtypeStruct((N, E_pad), jnp.float32),
        in_specs=[vmem, vmem, vmem],
        out_specs=vmem,
    )(y, gamma, beta)

    return out[:, :E]


if __name__ == "__main__":
    # Small synthetic shapes consistent with the module's forward: the resnet152 trunk
    # would emit (N, h, w, 2048); we scale down to N=32, 4x4 spatial, C=256, embed_size=32.
    N, Hf, Wf, C, E = 32, 4, 4, 256, 32

    key = jax.random.PRNGKey(0)
    k_feat, k_w, k_b, k_g, k_beta = jax.random.split(key, 5)

    # Trunk features in their native (NHWC, bf16) form — no wrapper-side upcast.
    trunk_features = jax.random.normal(
        k_feat, (N, Hf, Wf, C), dtype=jnp.float32
    ).astype(jnp.bfloat16)

    # Deterministic parameter init (nn.Linear-style uniform; BN affine params perturbed
    # around their 1/0 defaults so the affine path is actually exercised).
    bound = 1.0 / float(jnp.sqrt(float(C)))
    linear_w = jax.random.uniform(k_w, (E, C), minval=-bound, maxval=bound, dtype=jnp.float32)
    linear_b = jax.random.uniform(k_b, (E,), minval=-bound, maxval=bound, dtype=jnp.float32)
    bn_gamma = 1.0 + 0.1 * jax.random.normal(k_g, (E,), dtype=jnp.float32)
    bn_beta = 0.1 * jax.random.normal(k_beta, (E,), dtype=jnp.float32)

    out = encoder_cnn_forward(trunk_features, linear_w, linear_b, bn_gamma, bn_beta)
    out = jax.block_until_ready(out)

    # Pure-JAX reference of the head math (same bf16 features, f32 compute).
    feat32 = trunk_features.astype(jnp.float32).reshape(N, Hf * Wf, C)
    pooled_ref = feat32.mean(axis=1)
    y_ref = pooled_ref @ linear_w.T + linear_b
    mu = y_ref.mean(0, keepdims=True)
    var = ((y_ref - mu) ** 2).mean(0, keepdims=True)
    ref = bn_gamma * (y_ref - mu) / jnp.sqrt(var + BN_EPS) + bn_beta

    assert out.shape == (N, E)
    assert bool(jnp.allclose(out, ref, atol=1e-2, rtol=1e-2)), float(jnp.max(jnp.abs(out - ref)))

    print("KERNEL_OK")
</pallas_src>

<mosaic_0001>
module attributes {stable_mosaic.version = 11 : i64} {
  func.func @pool_linear_kernel(%arg0: i32, %arg1: memref<16x16x256xbf16, #tpu.memory_space<vmem>>, %arg2: memref<256x128xf32, #tpu.memory_space<vmem>>, %arg3: memref<1x128xf32, #tpu.memory_space<vmem>>, %arg4: memref<16x128xf32, #tpu.memory_space<vmem>>) attributes {dimension_semantics = [#tpu.dimension_semantics<parallel>], iteration_bounds = array<i64: 2>, scalar_prefetch = 0 : i64, scratch_operands = 0 : i64, tpu.core_type = #tpu.core_type<tc>, window_params = [{transform_indices = @transform_0, window_bounds = array<i64: 16, 16, 256>}, {pipeline_mode = #tpu.pipeline_mode<synchronous>, transform_indices = @transform_1, window_bounds = array<i64: 256, 128>}, {pipeline_mode = #tpu.pipeline_mode<synchronous>, transform_indices = @transform_2, window_bounds = array<i64: 1, 128>}, {transform_indices = @transform_3, window_bounds = array<i64: 16, 128>}]} {
    %c0 = arith.constant 0 : index
    %c0_0 = arith.constant 0 : index
    %c0_1 = arith.constant 0 : index
    %0 = vector.load %arg1[%c0, %c0_0, %c0_1] : memref<16x16x256xbf16, #tpu.memory_space<vmem>>, vector<16x16x256xbf16>
    %1 = arith.extf %0 : vector<16x16x256xbf16> to vector<16x16x256xf32>
    %cst = arith.constant dense<0.000000e+00> : vector<16x256xf32>
    %2 = vector.multi_reduction <add>, %1, %cst [1] : vector<16x16x256xf32> to vector<16x256xf32>
    %c0_2 = arith.constant 0 : index
    %c0_3 = arith.constant 0 : index
    %3 = vector.load %arg2[%c0_2, %c0_3] : memref<256x128xf32, #tpu.memory_space<vmem>>, vector<256x128xf32>
    %cst_4 = arith.constant dense<0.000000e+00> : vector<16x128xf32>
    %4 = tpu.matmul %2, %3, %cst_4 {dimension_numbers = #tpu.dot_dimension_numbers<[1], [0], [0], [1], [0, 0, 1, 1], [], []>} : vector<16x256xf32>, vector<256x128xf32>, vector<16x128xf32> -> vector<16x128xf32>
    %c0_5 = arith.constant 0 : index
    %c0_6 = arith.constant 0 : index
    %5 = vector.load %arg3[%c0_5, %c0_6] : memref<1x128xf32, #tpu.memory_space<vmem>>, vector<1x128xf32>
    %6 = vector.broadcast %5 : vector<1x128xf32> to vector<16x128xf32>
    %7 = arith.addf %4, %6 : vector<16x128xf32>
    %c0_7 = arith.constant 0 : index
    %c0_8 = arith.constant 0 : index
    %8 = vector.load %arg4[%c0_7, %c0_8] : memref<16x128xf32, #tpu.memory_space<vmem>>, vector<16x128xf32>
    tpu.vector_store %arg4[%c0_7, %c0_8], %7 {strides = array<i32>} : memref<16x128xf32, #tpu.memory_space<vmem>>, vector<16x128xf32>,
    return
  }
  func.func @transform_0(%arg0: i32) -> (i32, i32, i32) {
    %c0_i32 = arith.constant 0 : i32
    %c0_i32_0 = arith.constant 0 : i32
    %c0_i32_1 = arith.constant 0 : i32
    return %arg0, %c0_i32, %c0_i32_0 : i32, i32, i32
  }
  func.func @transform_1(%arg0: i32) -> (i32, i32) {
    %c0_i32 = arith.constant 0 : i32
    %c0_i32_0 = arith.constant 0 : i32
    %c0_i32_1 = arith.constant 0 : i32
    return %c0_i32, %c0_i32_0 : i32, i32
  }
  func.func @transform_2(%arg0: i32) -> (i32, i32) {
    %c0_i32 = arith.constant 0 : i32
    %c0_i32_0 = arith.constant 0 : i32
    %c0_i32_1 = arith.constant 0 : i32
    return %c0_i32, %c0_i32_0 : i32, i32
  }
  func.func @transform_3(%arg0: i32) -> (i32, i32) {
    %c0_i32 = arith.constant 0 : i32
    %c0_i32_0 = arith.constant 0 : i32
    return %arg0, %c0_i32 : i32, i32
  }
}

</mosaic_0001>

<bundles_post_ra>
// kernel: tpu_custom_call.1
= control target key start
LH: loop header
LB: loop body
LE: loop exit
PB: predicated region body
PF: predicated region fallthrough
CT: control target
= control target key end

     0   :  { %8 = vsyncpa [#allocation3], 0  ;;  %s1571_s0 = inlined_call_operand.hbm [shape: bf16[32,16,256], index: 0, kind: input, shape index: {}]   ;;  %s1572_s1 = inlined_call_operand.hbm [shape: f32[256,128], index: 1, kind: input, shape index: {}]   ;;  %s1573_s2 = inlined_call_operand.vmem [shape: f32[1,128], index: 2, kind: input, shape index: {}]   ;;  %s1574_s3 = inlined_call_operand.hbm [shape: f32[32,128], index: 3, kind: output, shape index: {}]  }
   0x1   :  { %10 = vsyncpa [#allocation3 + $0x1], 0 }
   0x2   :  { %11 = vsyncpa [#allocation6], 0 }
   0x3   :  { %12 = vsyncpa [#allocation4], 0 }
   0x4   :  { %14 = vsyncpa [#allocation4 + $0x1], 0  ;;  %s1136_s12 = smov 0   ;;  %s1138_s13 = smov 0  }
   0x5   :  { %s1140_s14 = smov 0   ;;  %s1142_s15 = smov 0  }
   0x6 LB: > { %s1157_s16 = sadd.s32 4294967295, %s1107_s15   ;;  %s811_s17 = sadd.s32 4294967294, %s1107_s15   ;;  %s1107_s15 = sphi %s1142_s15, %s1609_s15   ;;  %s1103_s14 = sphi %s1140_s14, %s1608_s14   ;;  %s1099_s13 = sphi %s1138_s13, %s1607_s13   ;;  %s1095_s12 = sphi %s1136_s12, %s1606_s12  }
   0x7   : > { %p40_p0 = scmp.ne.s32.totalorder %s1099_s13, %s1095_s12  ;;  %p1575_p1 = scmp.eq.s32.totalorder %s1157_s16, 0 }
   0x8   : > { %p112_p3 = scmp.eq.s32.totalorder %s811_s17, 1  ;;  %p812_p5 = scmp.ge.s32.totalorder %s1107_s15, 1 }
   0x9   : > { %p1166_p4 = por %p1575_p1, %p40_p0  ;;  %p119_p7 = scmp.lt.s32.totalorder %s1107_s15, 3 }
   0xa   : > { %p1171_p6 = por %p112_p3, %p40_p0  ;;  %s1109_s21 = smov [#allocation5]  }
   0xb   : > { %s1582_s18 = scalar_select %p1166_p4, 1, 0 }
   0xc   : > { %s1583_s19 = scalar_select %p1171_p6, 1, 0 }
   0xd   : > { %p1176_p8 = pnand %p812_p5, %p119_p7  ;;  %s131_s22 = sshll.u32 %s1109_s21, 4  ;;  %s1180_s22 = int_to_ptr.vmem [resolvable:$true] %s131_s22 }
   0xe   : > { %s1192_s24 = sadd.s32 1, %s1107_s15   ;;  %s27_s25 = sadd.s32 1, %s1103_s14 }
   0xf   : > { %s1584_s20 = scalar_select %p1176_p8, 1, 0 }
  0x10   : > { %p926_p9 = pneg %p1176_p8  ;;  %s24_s26 = ssub.s32 %s1107_s15, %s1192_s24 }
  0x11   : > { %s979_s29 = scalar_lea.hbm %s1572_s1, 4096 }
  0x12   : > { %p1187_p11 = pnand %p926_p9, %p1575_p1  ;;  %p980_p12 = scmp.ne.s32.totalorder %s1572_s1, %s979_s29 }
  0x13   : > { %p986_p5 = scmp.lt.u32.totalorder %s979_s29, %s1572_s1 }
  0x14   : > { %p981_p13 = pneg %p1187_p11 }
  0x16   : > { %p982_p0 = pnand %p981_p13, %p980_p12 }
  0x18   : > { %p983_p3 = pneg %p982_p0 }
  0x1a   : > { %p988_p7 = pnand %p986_p5, %p983_p3 }
  0x1c   : > { %991 = shalt.err (!%p988_p7)
}
  0x1d   : > { %s992_s7 = scalar_lea.vmem %s1180_s22, 4096  ;;  %p1000_p2 = scmp.lt.s32.totalorder %s1180_s22, %s1180_s22 }
  0x1e   : > { %p993_p9 = scmp.ne.s32.totalorder %s1180_s22, %s992_s7  ;;  %p1001_p6 = scmp.lt.s32.totalorder %s992_s7, %s992_s7 }
  0x20   : > { %p995_p10 = pnand %p993_p9, %p981_p13  ;;  %p1002_p4 = por %p1001_p6, %p1000_p2 }
  0x22   : > { %p996_p1 = pneg %p995_p10 }
  0x24   : > { %p1003_p8 = pnand %p1002_p4, %p996_p1 }
  0x26   : > { %1006 = shalt.err (!%p1003_p8)
}
  0x27   : > { %s1110_s8 = smov 128   ;;  %s1111_s9 = smov 8  }
  0x28   : > { %929 = dma.hbm_to_vmem [thread:$0]  (!%p1187_p11), %s1572_s1, 4096, %s1180_s22, [#allocation6], %s1110_s8, %s1110_s8, %s1111_s9  }
  0x29   : > { %p25_p1 = scmp.eq.s32.totalorder %s24_s26, 0  ;;  %p34_p2 = scmp.ne.s32.totalorder %s1103_s14, %s1099_s13 }
  0x2a   : > { %p35_p4 = scmp.eq.s32.totalorder %s1107_s15, 0  ;;  %p939_p6 = scmp.lt.s32.totalorder %s1107_s15, 2 }
  0x2b   : > { %s1226_s17 = scalar_select %p25_p1, %s1103_s14, %s27_s25  }
  0x2c   : > { %p36_p8 = por %p35_p4, %p34_p2  ;;  %p1586_p10 = scmp.eq.s32.totalorder %s1157_s16, 1 }
  0x2d   : > { %s148_s23 = sand.u32 1, %s1103_s14   ;;  %s830_s27 = sshll.u32 %s1107_s15, 12 }
  0x2e   : > { %p1230_p12 = por %p1586_p10, %p34_p2  ;;  %s815_s28 = sshll.u32 %s148_s23, 8 }
  0x2f   : > { %s1239_s4 = scalar_lea.hbm %s1571_s0, %s830_s27  ;;  %s152_s22 = scalar_lea.vmem [#allocation2], %s815_s28 }
  0x30   : > { %s160_s25 = sshll.u32 %s152_s22, 4  ;;  %p1241_p11 = pnand %p939_p6, %p36_p8  ;;  %s1245_s25 = int_to_ptr.vmem [resolvable:$true] %s160_s25 }
  0x31   : > { %s1247_s5 = scalar_lea.sflag [#allocation3], %s148_s23  ;;  %s1007_s6 = scalar_lea.hbm %s1239_s4, 4096 }
  0x32   : > { %p1008_p13 = scmp.ne.s32.totalorder %s1239_s4, %s1007_s6  ;;  %p1009_p0 = pneg %p1241_p11 }
  0x33   : > { %s1012_s11 = scalar_lea.hbm %s1571_s0, 8192  ;;  %p1013_p7 = scmp.lt.u32.totalorder %s1239_s4, %s1571_s0 }
  0x34   : > { %p1010_p3 = pnand %p1009_p0, %p1008_p13  ;;  %p1014_p9 = scmp.lt.u32.totalorder %s1012_s11, %s1007_s6 }
  0x35   : > { %p1016_p2 = scmp.lt.u32.totalorder %s1007_s6, %s1239_s4 }
  0x36   : > { %p1011_p5 = pneg %p1010_p3  ;;  %p1015_p1 = por %p1014_p9, %p1013_p7 }
  0x38   : > { %p1017_p4 = por %p1016_p2, %p1015_p1 }
  0x3a   : > { %p1018_p6 = pnand %p1017_p4, %p1011_p5 }
  0x3c   : > { %1021 = shalt.err (!%p1018_p6)
}
  0x3d   : > { %s1022_s23 = scalar_lea.vmem %s1245_s25, 4096  ;;  %s1112_s29 = smov [#allocation2]  }
  0x3e   : > { %p1023_p8 = scmp.ne.s32.totalorder %s1245_s25, %s1022_s23  ;;  %s1027_s30 = sshll.u32 %s1112_s29, 4  ;;  %s1028_s30 = int_to_ptr.vmem [resolvable:$false] %s1027_s30 }
  0x3f   : > { %s1029_s22 = scalar_lea.vmem %s1028_s30, 8192  ;;  %p1030_p3 = scmp.lt.s32.totalorder %s1245_s25, %s1028_s30 }
  0x40   : > { %p1025_p10 = pnand %p1023_p8, %p1009_p0  ;;  %p1031_p7 = scmp.lt.s32.totalorder %s1029_s22, %s1022_s23 }
  0x42   : > { %p1026_p13 = pneg %p1025_p10  ;;  %p1032_p9 = por %p1031_p7, %p1030_p3 }
  0x44   : > { %p1033_p1 = pnand %p1032_p9, %p1026_p13 }
  0x46   : > { %1036 = shalt.err (!%p1033_p1)
}
  0x47   : > { %933 = dma.hbm_to_vmem [thread:$0]  (!%p1241_p11), %s1239_s4, 4096, %s1245_s25, %s1247_s5, %s1110_s8, %s1110_s8, %s1111_s9  }
  0x48   : > { %p1589_p0 = scmp.ne.s32.totalorder %s1584_s20, 0 }
  0x4a   : > { %172 = sbr.rel (%p1589_p0) target bundleno = 417 (0x1a1), region = 32 }
  0x51   : > { %s1281_s6 = sand.u32 1, %s1099_s13   ;;  %p1590_p5 = scmp.ne.s32.totalorder %s1582_s18, 0 }
  0x52   : > { %s820_s7 = sshll.u32 %s1281_s6, 8  ;;  %s175_s10 = scalar_lea.sflag [#allocation3], %s1281_s6 }
  0x53   : > { %s1285_s11 = scalar_lea.vmem [#allocation2], %s820_s7 }
  0x54   : > { %1082 = dma.done.wait (%p1590_p5), %s175_s10, 4096  }
  0x55   : > { %1084 = vsyncadd (%p1590_p5), %s175_s10, 4294963200  ;;  %p1591_p11 = scmp.eq.s32.totalorder %s1157_s16, 0 }
  0x57   : > { %1086 = dma.done.wait (%p1591_p11), [#allocation6], 4096   ;;  %p1592_p2 = pmov %p1591_p11 }
  0x58   : > { %v543_v0 = vld [vmem:[#allocation5 + $0x80] sm:$0xff]  ;;  %v544_v1 = vld [vmem:[#allocation5 + $0x88] sm:$0xff]  ;;  %v545_v5 = vld [vmem:[#allocation5 + $0x90] sm:$0xff]  ;;  %vm598_vm0 = vcmask 1041409   ;;  %vm600_vm1 = vcmask 1042434   ;;  %vm602_vm2 = vcmask 1043459  }
  0x59   : > { %1088 = vsyncadd (%p1592_p2), [#allocation6], 4294963200  ;;  %v527_v2 = vld [vmem:[#allocation5] sm:$0xff]  ;;  %v870_v3 = vpack.c.bf16 %v544_v1, %v543_v0  ;;  %v528_v4 = vld [vmem:[#allocation5 + $0x8] sm:$0xff]  ;;  %vm604_vm3 = vcmask 1044484   ;;  %vm606_vm4 = vcmask 1045509  }
  0x5a   : > { %v546_v6 = vld [vmem:[#allocation5 + $0x98] sm:$0xff]  ;;  %v872_v7 = vpack.c.bf16 %v528_v4, %v527_v2  ;;  %v529_v9 = vld [vmem:[#allocation5 + $0x10] sm:$0xff]  ;;  %v547_v11 = vld [vmem:[#allocation5 + $0xa0] sm:$0xff]  ;;  %vm608_vm5 = vcmask 1046534   ;;  %vm610_vm6 = vcmask 1047559   ;;  %s822_s18 = sshll.u32 %s1281_s6, 4 }
  0x5b   : > { %v874_v8 = vpack.c.bf16 %v546_v6, %v545_v5  ;;  %v530_v10 = vld [vmem:[#allocation5 + $0x18] sm:$0xff]  ;;  %871 = vmatprep.subr.bf16.mxu0 %v870_v3  ;;  %902 = vmatprep.subr.bf16.mxu1 %v870_v3  ;;  %v548_v12 = vld [vmem:[#allocation5 + $0xa8] sm:$0xff]  ;;  %v531_v13 = vld [vmem:[#allocation5 + $0x20] sm:$0xff]  ;;  %s204_s9 = scalar_lea.vmem [#allocation7], %s822_s18  ;;  %s831_s25 = sshll.u32 %s1157_s16, 8 }
  0x5c   : > { %v532_v14 = vld [vmem:[#allocation5 + $0x28] sm:$0xff]  ;;  %873 = vmatpush3.bf16.msra.mxu0 %v872_v7  ;;  %910 = vmatpush3.bf16.msra.mxu1 %v872_v7  ;;  %v876_v15 = vpack.c.bf16 %v530_v10, %v529_v9  ;;  %v549_v16 = vld [vmem:[#allocation5 + $0xb0] sm:$0xff]  ;;  %v550_v17 = vld [vmem:[#allocation5 + $0xb8] sm:$0xff]  ;;  %v878_v19 = vpack.c.bf16 %v548_v12, %v547_v11  ;;  %s728_s4 = sshll.u32 %s204_s9, 4  ;;  %s1527_s27 = scalar_lea.hbm %s1574_s3, %s831_s25  ;;  %s1522_s4 = int_to_ptr.vmem [resolvable:$true] %s728_s4 }
  0x5d   : > { %v533_v18 = vld [vmem:[#allocation5 + $0x30] sm:$0xff]  ;;  %875 = vmatprep.subr.bf16.mxu0 %v874_v8  ;;  %903 = vmatprep.subr.bf16.mxu1 %v874_v8  ;;  %v534_v20 = vld [vmem:[#allocation5 + $0x38] sm:$0xff]  ;;  %v551_v21 = vld [vmem:[#allocation5 + $0xc0] sm:$0xff]  ;;  %v880_v29 = vpack.c.bf16 %v532_v14, %v531_v13  ;;  %v882_v30 = vpack.c.bf16 %v550_v17, %v549_v16  ;;  %s715_s28 = scalar_lea.sflag [#allocation4], %s1281_s6  ;;  %s1037_s23 = scalar_lea.vmem %s1522_s4, 256 }
  0x5e   : > { %v552_v22 = vld [vmem:[#allocation5 + $0xc8] sm:$0xff]  ;;  %v535_v23 = vld [vmem:[#allocation5 + $0x40] sm:$0xff]  ;;  %v553_v25 = vld [vmem:[#allocation5 + $0xd0] sm:$0xff]  ;;  %v884_v34 = vpack.c.bf16 %v534_v20, %v533_v18  ;;  %p1038_p4 = scmp.ne.s32.totalorder %s1522_s4, %s1037_s23  ;;  %s1113_s16 = smov [#allocation7]  }
  0x5f   : > { %v536_v24 = vld [vmem:[#allocation5 + $0x48] sm:$0xff]  ;;  %v554_v26 = vld [vmem:[#allocation5 + $0xd8] sm:$0xff]  ;;  %v537_v27 = vld [vmem:[#allocation5 + $0x50] sm:$0xff]  ;;  %v886_v35 = vpack.c.bf16 %v552_v22, %v551_v21  ;;  %s1041_s29 = sshll.u32 %s1113_s16, 4  ;;  %s1042_s29 = int_to_ptr.vmem [resolvable:$false] %s1041_s29 }
  0x60   : > { %v538_v28 = vld [vmem:[#allocation5 + $0x58] sm:$0xff]  ;;  %877 = vmatpush3.bf16.msra.mxu0 %v876_v15  ;;  %911 = vmatpush3.bf16.msra.mxu1 %v876_v15  ;;  %v555_v31 = vld [vmem:[#allocation5 + $0xe0] sm:$0xff]  ;;  %v556_v32 = vld [vmem:[#allocation5 + $0xe8] sm:$0xff]  ;;  %v1295_v36 = vpack.c.bf16 %v536_v24, %v535_v23  ;;  %v1297_v40 = vpack.c.bf16 %v554_v26, %v553_v25  ;;  %p1039_p6 = pnand %p1038_p4, %p1230_p12  ;;  %s1043_s30 = scalar_lea.vmem %s1042_s29, 512 }
  0x61   : > { %v539_v33 = vld [vmem:[#allocation5 + $0x60] sm:$0xff]  ;;  %879 = vmatprep.subr.bf16.mxu0 %v878_v19  ;;  %904 = vmatprep.subr.bf16.mxu1 %v878_v19  ;;  %v540_v37 = vld [vmem:[#allocation5 + $0x68] sm:$0xff]  ;;  %v557_v38 = vld [vmem:[#allocation5 + $0xf0] sm:$0xff]  ;;  %v1299_v41 = vpack.c.bf16 %v538_v28, %v537_v27  ;;  %v1301_v42 = vpack.c.bf16 %v556_v32, %v555_v31  ;;  %p1044_p10 = scmp.lt.s32.totalorder %s1522_s4, %s1042_s29  ;;  %p1045_p13 = scmp.lt.s32.totalorder %s1043_s30, %s1037_s23 }
  0x62   : > { %v558_v39 = vld [vmem:[#allocation5 + $0xf8] sm:$0xff]  ;;  %v1303_v43 = vpack.c.bf16 %v540_v37, %v539_v33  ;;  %v541_v44 = vld [vmem:[#allocation5 + $0x70] sm:$0xff]  ;;  %v1306_v46 = vld [vmem:[%s1285_s11] sm:$0xff]  ;;  %p1040_p8 = pneg %p1039_p6 }
  0x63   : > { %v542_v45 = vld [vmem:[#allocation5 + $0x78] sm:$0xff]  ;;  %v1308_v47 = vpack.c.bf16 %v558_v39, %v557_v38  ;;  %v1313_v49 = vld [vmem:[%s1285_s11 + $0x8] sm:$0xff]  ;;  %v1316_v50 = vld [vmem:[%s1285_s11 + $0x10] sm:$0xff]  ;;  %v240_v52 = vunpack.c.h.bf16 %v1306_v46  ;;  %p1046_p3 = por %p1045_p13, %p1044_p10 }
  0x64   : > { %v1310_v48 = vpack.c.bf16 %v542_v45, %v541_v44  ;;  %v1319_v51 = vld [vmem:[%s1285_s11 + $0x18] sm:$0xff]  ;;  %881 = vmatpush3.bf16.msra.mxu0 %v880_v29  ;;  %912 = vmatpush3.bf16.msra.mxu1 %v880_v29  ;;  %v1324_v54 = vld [vmem:[%s1285_s11 + $0x20] sm:$0xff]  ;;  %v1327_v55 = vld [vmem:[%s1285_s11 + $0x28] sm:$0xff]  ;;  %v242_v57 = vunpack.c.h.bf16 %v1313_v49  ;;  %v244_v58 = vunpack.c.h.bf16 %v1316_v50 }
  0x65   : > { %v1330_v56 = vld [vmem:[%s1285_s11 + $0x30] sm:$0xff]  ;;  %v246_v59 = vunpack.c.h.bf16 %v1319_v51  ;;  %883 = vmatprep.subr.bf16.mxu0 %v882_v30  ;;  %905 = vmatprep.subr.bf16.mxu1 %v882_v30  ;;  %v1337_v61 = vld [vmem:[%s1285_s11 + $0x38] sm:$0xff]  ;;  %v1340_v62 = vld [vmem:[%s1285_s11 + $0x40] sm:$0xff]  ;;  %v248_v0 = vunpack.c.h.bf16 %v1324_v54  ;;  %v250_v1 = vunpack.c.h.bf16 %v1327_v55  ;;  %p1047_p7 = pnand %p1046_p3, %p1040_p8 }
  0x66   : > { %v1343_v63 = vld [vmem:[%s1285_s11 + $0x48] sm:$0xff]  ;;  %v252_v2 = vunpack.c.h.bf16 %v1330_v56  ;;  %v1350_v4 = vld [vmem:[%s1285_s11 + $0x50] sm:$0xff]  ;;  %v1353_v5 = vld [vmem:[%s1285_s11 + $0x58] sm:$0xff]  ;;  %v254_v7 = vunpack.c.h.bf16 %v1337_v61  ;;  %v256_v8 = vunpack.c.h.bf16 %v1340_v62  ;;  %v310_v10 = vadd.f32 %v242_v57, %v240_v52 }
  0x67   : > { %v1356_v6 = vld [vmem:[%s1285_s11 + $0x60] sm:$0xff]  ;;  %v258_v9 = vunpack.c.h.bf16 %v1343_v63  ;;  %v1362_v11 = vld [vmem:[%s1285_s11 + $0x68] sm:$0xff]  ;;  %v1365_v12 = vld [vmem:[%s1285_s11 + $0x70] sm:$0xff]  ;;  %v260_v14 = vunpack.c.h.bf16 %v1350_v4  ;;  %v262_v15 = vunpack.c.h.bf16 %v1353_v5  ;;  %v324_v17 = vadd.f32 %v246_v59, %v244_v58 }
  0x68   : > { %v1368_v13 = vld [vmem:[%s1285_s11 + $0x78] sm:$0xff]  ;;  %v264_v16 = vunpack.c.h.bf16 %v1356_v6  ;;  %885 = vmatpush3.bf16.msra.mxu0 %v884_v34  ;;  %913 = vmatpush3.bf16.msra.mxu1 %v884_v34  ;;  %v266_v18 = vunpack.c.h.bf16 %v1362_v11  ;;  %v268_v19 = vunpack.c.h.bf16 %v1365_v12  ;;  %v311_v21 = vrot.slane %v310_v10, 4 }
  0x69   : > { %v270_v20 = vunpack.c.h.bf16 %v1368_v13  ;;  %887 = vmatprep.subr.bf16.mxu0 %v886_v35  ;;  %906 = vmatprep.subr.bf16.mxu1 %v886_v35  ;;  %v325_v22 = vrot.slane %v324_v17, 4  ;;  %v338_v23 = vadd.f32 %v250_v1, %v248_v0  ;;  %v352_v24 = vadd.f32 %v254_v7, %v252_v2 }
  0x6a   : > { %v366_v25 = vadd.f32 %v258_v9, %v256_v8  ;;  %v312_v26 = vadd.f32 %v311_v21, %v310_v10  ;;  %v380_v27 = vadd.f32 %v262_v15, %v260_v14  ;;  %v394_v28 = vadd.f32 %v266_v18, %v264_v16  ;;  %v1385_v18 = vld [vmem:[%s1285_s11 + $0x80] sm:$0xff] }
  0x6b   : > { %v408_v29 = vadd.f32 %v270_v20, %v268_v19  ;;  %v326_v30 = vadd.f32 %v325_v22, %v324_v17  ;;  %v339_v31 = vrot.slane %v338_v23, 4  ;;  %v353_v32 = vrot.slane %v352_v24, 4  ;;  %v1388_v22 = vld [vmem:[%s1285_s11 + $0x88] sm:$0xff] }
  0x6c   : > { %v367_v33 = vrot.slane %v366_v25, 4  ;;  %889 = vmatpush3.bf16.msra.mxu0 %v1295_v36  ;;  %914 = vmatpush3.bf16.msra.mxu1 %v1295_v36  ;;  %v313_v34 = vrot.slane %v312_v26, 2  ;;  %v381_v37 = vrot.slane %v380_v27, 4  ;;  %v395_v35 = vrot.slane %v394_v28, 4 }
  0x6d   : > { %v409_v38 = vrot.slane %v408_v29, 4  ;;  %891 = vmatprep.subr.bf16.mxu0 %v1297_v40  ;;  %907 = vmatprep.subr.bf16.mxu1 %v1297_v40  ;;  %v327_v39 = vrot.slane %v326_v30, 2  ;;  %v340_v44 = vadd.f32 %v339_v31, %v338_v23  ;;  %v354_v45 = vadd.f32 %v353_v32, %v352_v24  ;;  %v1399_v31 = vld [vmem:[%s1285_s11 + $0xa0] sm:$0xff] }
  0x6e   : > { %v368_v52 = vadd.f32 %v367_v33, %v366_v25  ;;  %v314_v57 = vadd.f32 %v313_v34, %v312_v26  ;;  %v382_v58 = vadd.f32 %v381_v37, %v380_v27  ;;  %v396_v59 = vadd.f32 %v395_v35, %v394_v28  ;;  %v1405_v37 = vld [vmem:[%s1285_s11 + $0xa8] sm:$0xff]  ;;  %v1408_v35 = vld [vmem:[%s1285_s11 + $0xb0] sm:$0xff] }
  0x6f   : > { %v410_v0 = vadd.f32 %v409_v38, %v408_v29  ;;  %v328_v36 = vadd.f32 %v327_v39, %v326_v30  ;;  %v341_v1 = vrot.slane %v340_v44, 2  ;;  %v355_v2 = vrot.slane %v354_v45, 2  ;;  %v1393_v29 = vld [vmem:[%s1285_s11 + $0x90] sm:$0xff]  ;;  %v1396_v30 = vld [vmem:[%s1285_s11 + $0x98] sm:$0xff] }
  0x70   : > { %v369_v7 = vrot.slane %v368_v52, 2  ;;  %893 = vmatpush3.bf16.msra.mxu0 %v1299_v41  ;;  %915 = vmatpush3.bf16.msra.mxu1 %v1299_v41  ;;  %v315_v40 = vrot.slane %v314_v57, 1  ;;  %v383_v8 = vrot.slane %v382_v58, 2  ;;  %v397_v9 = vrot.slane %v396_v59, 2  ;;  %v1411_v38 = vld [vmem:[%s1285_s11 + $0xb8] sm:$0xff] }
  0x71   : > { %v411_v10 = vrot.slane %v410_v0, 2  ;;  %895 = vmatprep.subr.bf16.mxu0 %v1301_v42  ;;  %908 = vmatprep.subr.bf16.mxu1 %v1301_v42  ;;  %v329_v14 = vrot.slane %v328_v36, 1  ;;  %v342_v15 = vadd.f32 %v341_v1, %v340_v44  ;;  %v356_v16 = vadd.f32 %v355_v2, %v354_v45  ;;  %v1429_v1 = vld [vmem:[%s1285_s11 + $0xe0] sm:$0xff]  ;;  %v1432_v2 = vld [vmem:[%s1285_s11 + $0xe8] sm:$0xff] }
  0x72   : > { %v370_v17 = vadd.f32 %v369_v7, %v368_v52  ;;  %v316_v41 = vadd.f32 %v315_v40, %v314_v57  ;;  %v384_v19 = vadd.f32 %v383_v8, %v382_v58  ;;  %v398_v20 = vadd.f32 %v397_v9, %v396_v59  ;;  %v1416_v57 = vld [vmem:[%s1285_s11 + $0xc0] sm:$0xff]  ;;  %v1419_v58 = vld [vmem:[%s1285_s11 + $0xc8] sm:$0xff]  ;;  %v1422_v59 = vld [vmem:[%s1285_s11 + $0xd0] sm:$0xff]  ;;  %1593 = vst [vmem:[#allocation11_spill] sm:$0xff] %v1429_v1 }
  0x73   : > { %v412_v21 = vadd.f32 %v411_v10, %v410_v0  ;;  %v330_v23 = vadd.f32 %v329_v14, %v328_v36  ;;  %v343_v24 = vrot.slane %v342_v15, 1  ;;  %v357_v25 = vrot.slane %v356_v16, 1  ;;  %v1426_v36 = vld [vmem:[%s1285_s11 + $0xd8] sm:$0xff]  ;;  %1594 = vst [vmem:[#allocation12_spill] sm:$0xff] %v1432_v2  ;;  %v1441_v10 = vld [vmem:[%s1285_s11 + $0xf0] sm:$0xff] }
  0x74   : > { %v371_v42 = vrot.slane %v370_v17, 1  ;;  %897 = vmatpush3.bf16.msra.mxu0 %v1303_v43  ;;  %916 = vmatpush3.bf16.msra.mxu1 %v1303_v43  ;;  %v385_v26 = vrot.slane %v384_v19, 1  ;;  %v399_v27 = vrot.slane %v398_v20, 1  ;;  %v272_v32 = vunpack.c.h.bf16 %v1385_v18  ;;  %1595 = vst [vmem:[#allocation13_spill] sm:$0xff] %v1441_v10  ;;  %v1444_v14 = vld [vmem:[%s1285_s11 + $0xf8] sm:$0xff] }
  0x75   : > { %v413_v28 = vrot.slane %v412_v21, 1  ;;  %899 = vmatprep.subr.bf16.mxu0 %v1308_v47  ;;  %909 = vmatprep.subr.bf16.mxu1 %v1308_v47  ;;  %v344_v43 = vadd.f32 %v343_v24, %v342_v15  ;;  %v358_v33 = vadd.f32 %v357_v25, %v356_v16  ;;  %v274_v39 = vunpack.c.h.bf16 %v1388_v22  ;;  %1596 = vst [vmem:[#allocation14_spill] sm:$0xff] %v1444_v14 }
  0x76   : > { %v372_v34 = vadd.f32 %v371_v42, %v370_v17  ;;  %v386_v44 = vadd.f32 %v385_v26, %v384_v19  ;;  %v400_v45 = vadd.f32 %v399_v27, %v398_v20  ;;  %v612_v47 = vsel %vm598_vm0, %v330_v23, %v316_v41 }
  0x77   : > { %v414_v52 = vadd.f32 %v413_v28, %v412_v21  ;;  %v613_v0 = vsel %vm600_vm1, %v344_v43, %v612_v47  ;;  %v276_v7 = vunpack.c.h.bf16 %v1393_v29  ;;  %v278_v40 = vunpack.c.h.bf16 %v1396_v30 }
  0x78   : > { %v280_v8 = vunpack.c.h.bf16 %v1399_v31  ;;  %901 = vmatpush3.bf16.msra.mxu0 %v1310_v48  ;;  %917 = vmatpush3.bf16.msra.mxu1 %v1310_v48  ;;  %v614_v9 = vsel %vm602_vm2, %v358_v33, %v613_v0  ;;  %v282_v15 = vunpack.c.h.bf16 %v1405_v37  ;;  %v284_v16 = vunpack.c.h.bf16 %v1408_v35 }
  0x79   : > { %v286_v17 = vunpack.c.h.bf16 %v1411_v38  ;;  %v615_v41 = vsel %vm604_vm3, %v372_v34, %v614_v9  ;;  %v288_v19 = vunpack.c.h.bf16 %v1416_v57  ;;  %v290_v20 = vunpack.c.h.bf16 %v1419_v58 }
  0x7a   : > { %v292_v48 = vunpack.c.h.bf16 %v1422_v59  ;;  %v616_v21 = vsel %vm606_vm4, %v386_v44, %v615_v41  ;;  %v294_v23 = vunpack.c.h.bf16 %v1426_v36  ;;  %v296_v24 = vunpack.c.h.bf16 %v1429_v1 }
  0x7b   : > { %v298_v25 = vunpack.c.h.bf16 %v1432_v2  ;;  %v617_v42 = vsel %vm608_vm5, %v400_v45, %v616_v21  ;;  %v300_v26 = vunpack.c.h.bf16 %v1441_v10  ;;  %v302_v27 = vunpack.c.h.bf16 %v1444_v14 }
  0x7c   : > { %v422_v28 = vadd.f32 %v274_v39, %v272_v32  ;;  %v618_v43 = vsel %vm610_vm6, %v414_v52, %v617_v42  ;;  %v436_v33 = vadd.f32 %v278_v40, %v276_v7  ;;  %v450_v34 = vadd.f32 %v282_v15, %v280_v8 }
  0x7d   : > { %v464_v47 = vadd.f32 %v286_v17, %v284_v16  ;;  %701 = vmatprep.mubr.f32.mxu0 %v618_v43  ;;  %v478_v0 = vadd.f32 %v290_v20, %v288_v19  ;;  %v492_v9 = vadd.f32 %v294_v23, %v292_v48  ;;  %v506_v41 = vadd.f32 %v298_v25, %v296_v24 }
  0x7e   : > { %v423_v44 = vrot.slane %v422_v28, 4  ;;  %v437_v3 = vrot.slane %v436_v33, 4  ;;  %v451_v60 = vrot.slane %v450_v34, 4  ;;  %v520_v2 = vadd.f32 %v302_v27, %v300_v26 }
  0x7f   : > { %v465_v53 = vrot.slane %v464_v47, 4  ;;  %v479_v21 = vrot.slane %v478_v0, 4  ;;  %v493_v10 = vrot.slane %v492_v9, 4  ;;  %v507_v1 = vrot.slane %v506_v41, 4 }
  0x80   : > { %v424_v45 = vadd.f32 %v423_v44, %v422_v28  ;;  %v438_v14 = vadd.f32 %v437_v3, %v436_v33  ;;  %v452_v32 = vadd.f32 %v451_v60, %v450_v34  ;;  %v521_v52 = vrot.slane %v520_v2, 4 }
  0x81   : > { %v466_v39 = vadd.f32 %v465_v53, %v464_v47  ;;  %v480_v40 = vadd.f32 %v479_v21, %v478_v0  ;;  %v494_v8 = vadd.f32 %v493_v10, %v492_v9  ;;  %v508_v15 = vadd.f32 %v507_v1, %v506_v41 }
  0x82   : > { %v425_v7 = vrot.slane %v424_v45, 2  ;;  %v439_v16 = vrot.slane %v438_v14, 2  ;;  %v453_v17 = vrot.slane %v452_v32, 2  ;;  %v522_v20 = vadd.f32 %v521_v52, %v520_v2 }
  0x83   : > { %v467_v19 = vrot.slane %v466_v39, 2  ;;  %v481_v23 = vrot.slane %v480_v40, 2  ;;  %v495_v24 = vrot.slane %v494_v8, 2  ;;  %v509_v25 = vrot.slane %v508_v15, 2 }
  0x84   : > { %v426_v48 = vadd.f32 %v425_v7, %v424_v45  ;;  %v440_v42 = vadd.f32 %v439_v16, %v438_v14  ;;  %v454_v26 = vadd.f32 %v453_v17, %v452_v32  ;;  %v523_v28 = vrot.slane %v522_v20, 2 }
  0x85   : > { %v468_v27 = vadd.f32 %v467_v19, %v466_v39  ;;  %v482_v60 = vadd.f32 %v481_v23, %v480_v40  ;;  %v496_v53 = vadd.f32 %v495_v24, %v494_v8  ;;  %v510_v43 = vadd.f32 %v509_v25, %v508_v15 }
  0x86   : > { %v427_v3 = vrot.slane %v426_v48, 1  ;;  %v441_v33 = vrot.slane %v440_v42, 1  ;;  %v455_v34 = vrot.slane %v454_v26, 1  ;;  %v524_v1 = vadd.f32 %v523_v28, %v522_v20 }
  0x87   : > { %v469_v10 = vrot.slane %v468_v27, 1  ;;  %v483_v44 = vrot.slane %v482_v60, 1  ;;  %v497_v0 = vrot.slane %v496_v53, 1  ;;  %v511_v2 = vrot.slane %v510_v43, 1 }
  0x88   : > { %v428_v47 = vadd.f32 %v427_v3, %v426_v48  ;;  %v442_v9 = vadd.f32 %v441_v33, %v440_v42  ;;  %v456_v41 = vadd.f32 %v455_v34, %v454_v26  ;;  %v525_v21 = vrot.slane %v524_v1, 1 }
  0x89   : > { %v470_v45 = vadd.f32 %v469_v10, %v468_v27  ;;  %v484_v14 = vadd.f32 %v483_v44, %v482_v60  ;;  %v498_v32 = vadd.f32 %v497_v0, %v496_v53  ;;  %v512_v39 = vadd.f32 %v511_v2, %v510_v43 }
  0x8a   : > { %v245_v52 = vunpack.c.l.bf16 %v1319_v51  ;;  %v526_v7 = vadd.f32 %v525_v21, %v524_v1  ;;  %v626_v40 = vsel %vm598_vm0, %v442_v9, %v428_v47  ;;  %v247_v8 = vunpack.c.l.bf16 %v1324_v54 }
  0x8b   : > { %v249_v15 = vunpack.c.l.bf16 %v1327_v55  ;;  %v627_v16 = vsel %vm600_vm1, %v456_v41, %v626_v40  ;;  %v251_v17 = vunpack.c.l.bf16 %v1330_v56  ;;  %v253_v19 = vunpack.c.l.bf16 %v1337_v61 }
  0x8c   : > { %v255_v20 = vunpack.c.l.bf16 %v1340_v62  ;;  %v628_v48 = vsel %vm602_vm2, %v470_v45, %v627_v16  ;;  %v257_v23 = vunpack.c.l.bf16 %v1343_v63  ;;  %v259_v51 = vunpack.c.l.bf16 %v1350_v4 }
  0x8d   : > { %v261_v24 = vunpack.c.l.bf16 %v1353_v5  ;;  %v629_v54 = vsel %vm604_vm3, %v484_v14, %v628_v48  ;;  %v263_v55 = vunpack.c.l.bf16 %v1356_v6  ;;  %v265_v25 = vunpack.c.l.bf16 %v1362_v11 }
  0x8e   : > { %v267_v56 = vunpack.c.l.bf16 %v1365_v12  ;;  %v630_v61 = vsel %vm606_vm4, %v498_v32, %v629_v54  ;;  %v269_v62 = vunpack.c.l.bf16 %v1368_v13  ;;  %v1597_v42 = vunpack.c.l.bf16 %v1306_v46 }
  0x8f   : > { %v1598_v63 = vunpack.c.l.bf16 %v1313_v49  ;;  %v1599_v4 = vunpack.c.l.bf16 %v1316_v50  ;;  %v631_v27 = vsel %vm608_vm5, %v512_v39, %v630_v61  ;;  %v331_v28 = vadd.f32 %v249_v15, %v247_v8 }
  0x90   : > { %v345_v6 = vadd.f32 %v253_v19, %v251_v17  ;;  %v359_v3 = vadd.f32 %v257_v23, %v255_v20  ;;  %v632_v11 = vsel %vm610_vm6, %v526_v7, %v631_v27  ;;  %v373_v53 = vadd.f32 %v261_v24, %v259_v51 }
  0x91   : > { %v303_v26 = vadd.f32 %v1598_v63, %v1597_v42  ;;  %v317_v5 = vadd.f32 %v245_v52, %v1599_v4  ;;  %706 = vmatprep.mubr.f32.mxu1 %v632_v11  ;;  %v332_v13 = vrot.slane %v331_v28, 4  ;;  %v387_v33 = vadd.f32 %v265_v25, %v263_v55 }
  0x92   : > { %v346_v43 = vrot.slane %v345_v6, 4  ;;  %v360_v46 = vrot.slane %v359_v3, 4  ;;  %v374_v10 = vrot.slane %v373_v53, 4  ;;  %v401_v50 = vadd.f32 %v269_v62, %v267_v56 }
  0x93   : > { %v304_v12 = vrot.slane %v303_v26, 4  ;;  %v318_v60 = vrot.slane %v317_v5, 4  ;;  %v333_v1 = vadd.f32 %v332_v13, %v331_v28  ;;  %v388_v0 = vrot.slane %v387_v33, 4 }
  0x94   : > { %v347_v47 = vadd.f32 %v346_v43, %v345_v6  ;;  %v361_v44 = vadd.f32 %v360_v46, %v359_v3  ;;  %v375_v41 = vadd.f32 %v374_v10, %v373_v53  ;;  %v402_v45 = vrot.slane %v401_v50, 4 }
  0x95   : > { %v305_v49 = vadd.f32 %v304_v12, %v303_v26  ;;  %v319_v34 = vadd.f32 %v318_v60, %v317_v5  ;;  %v334_v21 = vrot.slane %v333_v1, 2  ;;  %v389_v39 = vadd.f32 %v388_v0, %v387_v33  ;;  %v1601_v0 = vld [vmem:[#allocation12_spill] sm:$0xff] }
  0x96   : > { %v348_v14 = vrot.slane %v347_v47, 2  ;;  %v362_v32 = vrot.slane %v361_v44, 2  ;;  %v376_v40 = vrot.slane %v375_v41, 2  ;;  %v403_v8 = vadd.f32 %v402_v45, %v401_v50 }
  0x97   : > { %v306_v2 = vrot.slane %v305_v49, 2  ;;  %v320_v9 = vrot.slane %v319_v34, 2  ;;  %v335_v15 = vadd.f32 %v334_v21, %v333_v1  ;;  %v390_v19 = vrot.slane %v389_v39, 2 }
  0x98   : > { %v349_v16 = vadd.f32 %v348_v14, %v347_v47  ;;  %v363_v17 = vadd.f32 %v362_v32, %v361_v44  ;;  %v377_v23 = vadd.f32 %v376_v40, %v375_v41  ;;  %v404_v51 = vrot.slane %v403_v8, 2  ;;  %v1600_v47 = vld [vmem:[#allocation11_spill] sm:$0xff] }
  0x99   : > { %v307_v52 = vadd.f32 %v306_v2, %v305_v49  ;;  %v321_v7 = vadd.f32 %v320_v9, %v319_v34  ;;  %v336_v24 = vrot.slane %v335_v15, 1  ;;  %v391_v25 = vadd.f32 %v390_v19, %v389_v39  ;;  %v1602_v2 = vld [vmem:[#allocation13_spill] sm:$0xff]  ;;  %v1603_v9 = vld [vmem:[#allocation14_spill] sm:$0xff] }
  0x9a   : > { %v350_v54 = vrot.slane %v349_v16, 1  ;;  %v364_v55 = vrot.slane %v363_v17, 1  ;;  %v378_v62 = vrot.slane %v377_v23, 1  ;;  %v405_v42 = vadd.f32 %v404_v51, %v403_v8 }
  0x9b   : > { %v308_v20 = vrot.slane %v307_v52, 1  ;;  %v322_v48 = vrot.slane %v321_v7, 1  ;;  %v337_v63 = vadd.f32 %v336_v24, %v335_v15  ;;  %v392_v5 = vrot.slane %v391_v25, 1 }
  0x9c   : > { %v351_v26 = vadd.f32 %v350_v54, %v349_v16  ;;  %v365_v4 = vadd.f32 %v364_v55, %v363_v17  ;;  %v379_v27 = vadd.f32 %v378_v62, %v377_v23  ;;  %v406_v28 = vrot.slane %v405_v42, 1 }
  0x9d   : > { %v309_v56 = vadd.f32 %v308_v20, %v307_v52  ;;  %v323_v61 = vadd.f32 %v322_v48, %v321_v7  ;;  %v271_v3 = vunpack.c.l.bf16 %v1385_v18  ;;  %v393_v11 = vadd.f32 %v392_v5, %v391_v25 }
  0x9e   : > { %v273_v60 = vunpack.c.l.bf16 %v1388_v22  ;;  %v275_v53 = vunpack.c.l.bf16 %v1393_v29  ;;  %v407_v13 = vadd.f32 %v406_v28, %v405_v42  ;;  %v277_v46 = vunpack.c.l.bf16 %v1396_v30 }
  0x9f   : > { %v599_v6 = vsel %vm598_vm0, %v323_v61, %v309_v56  ;;  %v279_v33 = vunpack.c.l.bf16 %v1399_v31  ;;  %v281_v34 = vunpack.c.l.bf16 %v1405_v37  ;;  %v283_v18 = vunpack.c.l.bf16 %v1408_v35 }
  0xa0   : > { %v601_v12 = vsel %vm600_vm1, %v337_v63, %v599_v6  ;;  %v285_v10 = vunpack.c.l.bf16 %v1411_v38  ;;  %v287_v22 = vunpack.c.l.bf16 %v1416_v57  ;;  %v289_v29 = vunpack.c.l.bf16 %v1419_v58 }
  0xa1   : > { %v603_v43 = vsel %vm602_vm2, %v351_v26, %v601_v12  ;;  %v291_v1 = vunpack.c.l.bf16 %v1422_v59  ;;  %v293_v31 = vunpack.c.l.bf16 %v1426_v36  ;;  %v295_v44 = vunpack.c.l.bf16 %v1600_v47 }
  0xa2   : > { %v605_v49 = vsel %vm604_vm3, %v365_v4, %v603_v43  ;;  %v297_v37 = vunpack.c.l.bf16 %v1601_v0  ;;  %v299_v38 = vunpack.c.l.bf16 %v1602_v2  ;;  %v301_v41 = vunpack.c.l.bf16 %v1603_v9 }
  0xa3   : > { %v607_v50 = vsel %vm606_vm4, %v379_v27, %v605_v49  ;;  %v415_v45 = vadd.f32 %v273_v60, %v271_v3  ;;  %v429_v57 = vadd.f32 %v277_v46, %v275_v53  ;;  %v443_v58 = vadd.f32 %v281_v34, %v279_v33 }
  0xa4   : > { %v609_v30 = vsel %vm608_vm5, %v393_v11, %v607_v50  ;;  %v457_v21 = vadd.f32 %v285_v10, %v283_v18  ;;  %v471_v59 = vadd.f32 %v289_v29, %v287_v22  ;;  %v485_v32 = vadd.f32 %v293_v31, %v291_v1 }
  0xa5   : > { %v611_v35 = vsel %vm610_vm6, %v407_v13, %v609_v30  ;;  %v416_v14 = vrot.slane %v415_v45, 4  ;;  %v499_v39 = vadd.f32 %v297_v37, %v295_v44  ;;  %v513_v36 = vadd.f32 %v301_v41, %v299_v38 }
  0xa6   : > { %702 = vmatmul.mubr.f32.vlgmr.msra.gmra.mrb[0].mxu0 %v611_v35  ;;  %v430_v52 = vrot.slane %v429_v57, 4  ;;  %v444_v7 = vrot.slane %v443_v58, 4  ;;  %v458_v40 = vrot.slane %v457_v21, 4  ;;  %v472_v8 = vrot.slane %v471_v59, 4 }
  0xa7   : > { %v417_v15 = vadd.f32 %v416_v14, %v415_v45  ;;  %v486_v16 = vrot.slane %v485_v32, 4  ;;  %v500_v17 = vrot.slane %v499_v39, 4  ;;  %v514_v19 = vrot.slane %v513_v36, 4  ;;  %v823_v45 = vld [vmem:[%s1573_s2] ss:$0 sm:$0xff] }
  0xa8   : > { %v431_v20 = vadd.f32 %v430_v52, %v429_v57  ;;  %v445_v48 = vadd.f32 %v444_v7, %v443_v58  ;;  %v459_v23 = vadd.f32 %v458_v40, %v457_v21  ;;  %v473_v51 = vadd.f32 %v472_v8, %v471_v59 }
  0xa9   : > { %v418_v24 = vrot.slane %v417_v15, 2  ;;  %v487_v54 = vadd.f32 %v486_v16, %v485_v32  ;;  %v501_v55 = vadd.f32 %v500_v17, %v499_v39  ;;  %v515_v25 = vadd.f32 %v514_v19, %v513_v36 }
  0xaa   : > { %v432_v56 = vrot.slane %v431_v20, 2  ;;  %v446_v61 = vrot.slane %v445_v48, 2  ;;  %v460_v62 = vrot.slane %v459_v23, 2  ;;  %v474_v42 = vrot.slane %v473_v51, 2 }
  0xab   : > { %v419_v63 = vadd.f32 %v418_v24, %v417_v15  ;;  %v488_v26 = vrot.slane %v487_v54, 2  ;;  %v502_v4 = vrot.slane %v501_v55, 2  ;;  %v516_v5 = vrot.slane %v515_v25, 2 }
  0xac   : > { %v433_v27 = vadd.f32 %v432_v56, %v431_v20  ;;  %v447_v28 = vadd.f32 %v446_v61, %v445_v48  ;;  %v461_v6 = vadd.f32 %v460_v62, %v459_v23  ;;  %v475_v3 = vadd.f32 %v474_v42, %v473_v51 }
  0xad   : > { %v420_v11 = vrot.slane %v419_v63, 1  ;;  %v489_v12 = vadd.f32 %v488_v26, %v487_v54  ;;  %v503_v60 = vadd.f32 %v502_v4, %v501_v55  ;;  %v517_v53 = vadd.f32 %v516_v5, %v515_v25 }
  0xae   : > { %v434_v13 = vrot.slane %v433_v27, 1  ;;  %v448_v43 = vrot.slane %v447_v28, 1  ;;  %v462_v46 = vrot.slane %v461_v6, 1  ;;  %v476_v33 = vrot.slane %v475_v3, 1 }
  0xaf   : > { %v421_v49 = vadd.f32 %v420_v11, %v419_v63  ;;  %v490_v34 = vrot.slane %v489_v12, 1  ;;  %v504_v18 = vrot.slane %v503_v60, 1  ;;  %v518_v29 = vrot.slane %v517_v53, 1 }
  0xb0   : > { %v435_v10 = vadd.f32 %v434_v13, %v433_v27  ;;  %v449_v50 = vadd.f32 %v448_v43, %v447_v28  ;;  %v463_v22 = vadd.f32 %v462_v46, %v461_v6  ;;  %v477_v1 = vadd.f32 %v476_v33, %v475_v3 }
  0xb1   : > { %v491_v30 = vadd.f32 %v490_v34, %v489_v12  ;;  %v505_v47 = vadd.f32 %v504_v18, %v503_v60  ;;  %v519_v0 = vadd.f32 %v518_v29, %v517_v53 }
  0xb2   : > { %v619_v31 = vsel %vm598_vm0, %v435_v10, %v421_v49 }
  0xb3   : > { %v620_v44 = vsel %vm600_vm1, %v449_v50, %v619_v31 }
  0xb4   : > { %v621_v37 = vsel %vm602_vm2, %v463_v22, %v620_v44 }
  0xb5   : > { %v622_v35 = vsel %vm604_vm3, %v477_v1, %v621_v37 }
  0xb6   : > { %v623_v2 = vsel %vm606_vm4, %v491_v30, %v622_v35 }
  0xb7   : > { %v624_v38 = vsel %vm608_vm5, %v505_v47, %v623_v2 }
  0xb8   : > { %v625_v9 = vsel %vm610_vm6, %v519_v0, %v624_v38 }
  0xb9   : > { %707 = vmatmul.mubr.f32.vlgmr.msra.gmra.mrb[0].mxu1 %v625_v9 }
 0x179   : > { %v864_v41 = vpop.f32.mrb[0].mxu0 }
 0x17a   : > { %v865_v57 = vpop.f32.mrb[1].mxu0 }
 0x17b   : > { %v866_v58 = vadd.f32 %v865_v57, %v864_v41 }
 0x17d   : > { %v704_v21 = vadd.f32 %v866_v58, %v823_v45 }
 0x17f   : > { %712 = vst [vmem:[%s204_s9] sm:$0xff] %v704_v21 }
 0x18c   : > { %v867_v59 = vpop.f32.mrb[0].mxu1 }
 0x18d   : > { %v868_v14 = vpop.f32.mrb[1].mxu1 }
 0x18e   : > { %v869_v32 = vadd.f32 %v868_v14, %v867_v59 }
 0x190   : > { %v709_v39 = vadd.f32 %v869_v32, %v823_v45 }
 0x192   : > { %713 = vst [vmem:[%s204_s9 + $0x8] sm:$0xff] %v709_v39 }
 0x193   : > { %1050 = shalt.err (!%p1047_p7)
}
 0x194   : > { %s1051_s22 = scalar_lea.hbm %s1527_s27, 256  ;;  %s1055_s11 = scalar_lea.hbm %s1574_s3, 512 }
 0x195   : > { %p1052_p9 = scmp.ne.s32.totalorder %s1527_s27, %s1051_s22  ;;  %p1056_p5 = scmp.lt.u32.totalorder %s1527_s27, %s1574_s3 }
 0x196   : > { %p1057_p11 = scmp.lt.u32.totalorder %s1055_s11, %s1051_s22  ;;  %p1059_p4 = scmp.lt.u32.totalorder %s1051_s22, %s1527_s27 }
 0x197   : > { %p1053_p1 = pnand %p1052_p9, %p1230_p12 }
 0x198   : > { %p1058_p2 = por %p1057_p11, %p1056_p5 }
 0x199   : > { %p1054_p0 = pneg %p1053_p1 }
 0x19a   : > { %p1060_p6 = por %p1059_p4, %p1058_p2 }
 0x19c   : > { %p1061_p8 = pnand %p1060_p6, %p1054_p0 }
 0x19e   : > { %1064 = shalt.err (!%p1061_p8)
}
 0x19f   : > { %s1114_s8 = smov 128   ;;  %s1115_s9 = smov 8  }
 0x1a0   : > { %924 = dma.vmem_to_hbm [thread:$0]  (%p1230_p12), %s1522_s4, 256, %s1527_s27, %s715_s28, %s1114_s8, %s1114_s8, %s1115_s9  }
 0x1a1 PF: > { %s743_s25 = sand.u32 1, %s1095_s12   ;;  %p1604_p10 = scmp.ne.s32.totalorder %s1583_s19, 0 }
 0x1a2   : > { %p1605_p13 = scmp.ge.s32.totalorder %s1107_s15, 2  ;;  %s744_s26 = scalar_lea.sflag [#allocation4], %s743_s25 }
 0x1a4   : > { %p935_p3 = pnand %p1605_p13, %p1604_p10 }
 0x1a6   : > { %1090 = dma.done.wait (!%p935_p3), %s744_s26, 256  }
 0x1a7   : > { %1092 = vsyncadd (!%p935_p3), %s744_s26, 4294967040  ;;  %p17_p7 = scmp.ge.s32.totalorder %s1192_s24, 4   ;;  %s1606_s12 = smov %s1099_s13 }
 0x1a8   : > { %s1607_s13 = smov %s1103_s14  ;;  %s1608_s14 = smov %s1226_s17 }
 0x1a9   : > { %s1609_s15 = smov %s1192_s24  ;;  %19 = sbr.rel (!%p17_p7) target bundleno = 6 (0x6), region = 81 }
 0x1b0   :  { %749 = vsyncpa [#allocation3], 1 }
 0x1b1   :  { %751 = vsyncpa [#allocation3 + $0x1], 1 }
 0x1b2   :  { %752 = vsyncpa [#allocation6], 1 }
 0x1b3   :  { %753 = vsyncpa [#allocation4], 1 }
 0x1b4   :  { %755 = vsyncpa [#allocation4 + $0x1], 1 }

</bundles_post_ra>
